<compile_context>
chip_gen: v7x
topology: tpu7x:2x2x1
jax: 0.10.0
libtpu: 0.0.40
codegen_flags: <defaults>
</compile_context>

<pallas_src>
import jax
import jax.numpy as jnp
from jax.experimental import pallas as pl
from jax.experimental.pallas import tpu as pltpu


def _uwl_kernel(params_ref, losses_ref, weights_ref, out_ref):
    """out = sum_i [ w_i^2 * l_i + wd * log1p(1 / w_i^2) ].

    params_ref:  SMEM f32[1]    -- [weight_decay]
    losses_ref:  VMEM f32[1, n] -- per-task scalar losses
    weights_ref: VMEM f32[1, n] -- learnable uncertainty weights
    out_ref:     VMEM f32[1, 1]
    """
    wd = params_ref[0]                 # scalar f32 from SMEM (splat on use)
    l = losses_ref[...]                # f32[1, n]
    w = weights_ref[...]               # f32[1, n]

    w2 = w * w
    term = w2 * l + wd * jnp.log1p(1.0 / w2)          # VPU + EUP, one pass
    out_ref[...] = jnp.sum(term, axis=-1, keepdims=True)   # XLU lane reduce -> (1,1)


@jax.jit
def _uwl_jit(losses, weights, params):
    n = losses.shape[0]                # static under jit
    # Direct full-array inputs; reshape (n,) -> (1, n) is layout-only, no copy
    # fusion / HBM slab like the previous stack+pad version.
    l2 = losses.reshape(1, n).astype(jnp.float32)
    w2 = weights.reshape(1, n).astype(jnp.float32)

    out = pl.pallas_call(
        _uwl_kernel,
        out_shape=jax.ShapeDtypeStruct((1, 1), jnp.float32),
        in_specs=[
            pl.BlockSpec(memory_space=pltpu.MemorySpace.SMEM),   # weight_decay
            pl.BlockSpec(memory_space=pltpu.MemorySpace.VMEM),   # losses  (1, n)
            pl.BlockSpec(memory_space=pltpu.MemorySpace.VMEM),   # weights (1, n)
        ],
        out_specs=pl.BlockSpec(memory_space=pltpu.MemorySpace.VMEM),
    )(params, l2, w2)
    return out.reshape(())


def uncertainty_weight_loss(losses, weights, weight_decay=0.01):
    """JAX wrapper mirroring UncertaintyWeightLoss.forward.

    losses:  f32[N]  -- the N scalar task losses
    weights: f32[N]  -- the learnable uncertainty weights (sigma_i)
    returns: f32 scalar

    Note: N is baked into the compiled kernel (static shape under jit);
    changing the number of tasks recompiles, as expected.
    """
    n = losses.shape[0]
    assert weights.shape[0] == n and n >= 2, "at least 2 losses should be provided"
    params = jnp.asarray([weight_decay], dtype=jnp.float32)  # runtime scalar, no recompile
    return _uwl_jit(losses, weights, params)


def _reference(losses, weights, weight_decay=0.01):
    """Pure-JAX reference mirroring the PyTorch forward loop exactly."""
    loss_sum = 0.0
    for idx in range(losses.shape[0]):
        w2 = weights[idx] ** 2
        loss_sum = loss_sum + w2 * losses[idx] + weight_decay * jnp.log(1.0 + 1.0 / w2)
    return loss_sum


if __name__ == "__main__":
    # Module config (mirrors __init__ args): 3 tasks, deterministic init weights.
    loss_types = ["ctc", "ce", "mse"]
    init_weights = jnp.array([1.0, 0.5, 2.0], dtype=jnp.float32)
    weight_decay = 0.01

    # Deterministic example "losses" (scalar per task), as forward() expects.
    key = jax.random.PRNGKey(0)
    losses = jax.random.uniform(key, (len(loss_types),), dtype=jnp.float32,
                                minval=0.1, maxval=3.0)

    out = uncertainty_weight_loss(losses, init_weights, weight_decay)
    out = jax.block_until_ready(out)

    ref = _reference(losses, init_weights, weight_decay)
    assert jnp.allclose(out, ref, rtol=1e-5, atol=1e-5), (out, ref)

    print("KERNEL_OK")
</pallas_src>

<mosaic_0001>
module attributes {stable_mosaic.version = 11 : i64} {
  func.func @_uwl_kernel(%arg0: memref<1xf32, #tpu.memory_space<smem>>, %arg1: memref<1x3xf32, #tpu.memory_space<vmem>>, %arg2: memref<1x3xf32, #tpu.memory_space<vmem>>, %arg3: memref<1x1xf32, #tpu.memory_space<vmem>>) attributes {dimension_semantics = [], scalar_prefetch = 0 : i64, scratch_operands = 0 : i64, tpu.core_type = #tpu.core_type<tc>} {
    %c0 = arith.constant 0 : index
    %0 = memref.load %arg0[%c0] : memref<1xf32, #tpu.memory_space<smem>>
    %c0_0 = arith.constant 0 : index
    %c0_1 = arith.constant 0 : index
    %1 = vector.load %arg1[%c0_0, %c0_1] : memref<1x3xf32, #tpu.memory_space<vmem>>, vector<1x3xf32>
    %c0_2 = arith.constant 0 : index
    %c0_3 = arith.constant 0 : index
    %2 = vector.load %arg2[%c0_2, %c0_3] : memref<1x3xf32, #tpu.memory_space<vmem>>, vector<1x3xf32>
    %3 = arith.mulf %2, %2 : vector<1x3xf32>
    %4 = arith.mulf %3, %1 : vector<1x3xf32>
    %cst = arith.constant 1.000000e+00 : f32
    %5 = vector.broadcast %cst : f32 to vector<1x3xf32>
    %6 = arith.divf %5, %3 : vector<1x3xf32>
    %7 = math.log1p %6 : vector<1x3xf32>
    %8 = vector.broadcast %0 : f32 to vector<1x3xf32>
    %9 = arith.mulf %8, %7 : vector<1x3xf32>
    %10 = arith.addf %4, %9 : vector<1x3xf32>
    %cst_4 = arith.constant dense<0.000000e+00> : vector<1xf32>
    %11 = vector.multi_reduction <add>, %10, %cst_4 [1] : vector<1x3xf32> to vector<1xf32>
    %12 = vector.shape_cast %11 : vector<1xf32> to vector<1x1xf32>
    %c0_5 = arith.constant 0 : index
    %c0_6 = arith.constant 0 : index
    %13 = vector.load %arg3[%c0_5, %c0_6] : memref<1x1xf32, #tpu.memory_space<vmem>>, vector<1x1xf32>
    tpu.vector_store %arg3[%c0_5, %c0_6], %12 {strides = array<i32>} : memref<1x1xf32, #tpu.memory_space<vmem>>, vector<1x1xf32>,
    return
  }
}

</mosaic_0001>

<bundles_post_ra>
// kernel: _uwl_jit.1
= control target key start
LH: loop header
LB: loop body
LE: loop exit
PB: predicated region body
PF: predicated region fallthrough
CT: control target
= control target key end

     0   :  { %s126_s0 = inlined_call_operand.<no memory space> [shape: f32[1], index: 0, kind: input, shape index: {}]   ;;  %s127_s1 = inlined_call_operand.vmem [shape: f32[1,3], index: 1, kind: input, shape index: {}]   ;;  %s128_s2 = inlined_call_operand.vmem [shape: f32[1,3], index: 2, kind: input, shape index: {}]   ;;  %s129_s3 = inlined_call_operand.hbm [shape: f32[1,1], index: 3, kind: output, shape index: {}]  }
   0x1   :  { %v18_v0 = vld [vmem:[%s128_s2] sm:$0x1] }
   0x2   :  { %v19_v1 = vmul.f32 %v18_v0, %v18_v0 }
   0x3   :  { %9 = vsyncpa [#allocation4], 0  ;;  %v17_v7 = vld [vmem:[%s127_s1] sm:$0x1]  ;;  %v32_v11 = vstv %s126_s0  ;;  %vm35_vm1 = vcmask 16384   ;;  %s84_s2 = smov [#allocation3]  }
   0x4   :  { %56 = vrcp.f32 %v19_v1  ;;  %v20_v12 = vmul.f32 %v19_v1, %v17_v7  ;;  %s47_s18 = sshll.u32 %s84_s2, 4  ;;  %vm39_vm2 = vcmask 0   ;;  %s48_s18 = int_to_ptr.vmem [resolvable:$true] %s47_s18 }
   0x5   :  { %s60_s1 = scalar_lea.vmem %s48_s18, 16  ;;  %s64_s19 = scalar_lea.vmem %s48_s18, 32 }
   0x6   :  { %p61_p0 = scmp.ne.s32.totalorder %s48_s18, %s60_s1  ;;  %p65_p1 = scmp.lt.s32.totalorder %s48_s18, %s48_s18 }
   0x7   :  { %p66_p2 = scmp.lt.s32.totalorder %s64_s19, %s60_s1 }
   0x9   :  { %p67_p3 = por %p66_p2, %p65_p1 }
   0xb   :  { %p68_p4 = pnand %p67_p3, %p61_p0 }
   0xe   :  { %v57_v2 = vpop.eup %56 }
   0xf   :  { %v23_v3 = vadd.f32 1.0, %v57_v2  ;;  %v26_v4 = vmul.f32 -0.5, %v57_v2  ;;  %v29_v6 = vand.u32 2147483647, %v57_v2 }
  0x11   :  { %58 = vlog2.f32 %v23_v3  ;;  %v27_v5 = vadd.f32 1.0, %v26_v4  ;;  %vm30_vm0 = vcmp.lt.f32.partialorder %v29_v6, 0.0004427343 }
  0x13   :  { %v28_v8 = vmul.f32 %v57_v2, %v27_v5 }
  0x1b   :  { %v59_v9 = vpop.eup %58 }
  0x1c   :  { %v25_v10 = vmul.f32 0.6931472, %v59_v9 }
  0x1e   :  { %v31_v13 = vsel %vm30_vm0, %v28_v8, %v25_v10 }
  0x1f   :  { %v33_v14 = vmul.f32 %v32_v11, %v31_v13 }
  0x21   :  { %v34_v15 = vadd.f32 %v33_v14, %v20_v12 }
  0x23   :  { %v36_v16 = vsel %vm35_vm1, %v34_v15, 0.0 }
  0x24   :  { %37 = vadd.xlane.f32.xlu0 %v36_v16 }
  0xb1   :  { %v38_v17 = vpop.xlane.xlu0 %37 }
  0xb2   :  { %40 = vst.msk [vmem:[#allocation3] sm:$0x1] %vm39_vm2, %v38_v17 }
  0xb3   :  { %71 = shalt.err (!%p68_p4)
}
  0xb4   :  { %s72_s21 = scalar_lea.hbm %s129_s3, 16 }
  0xb5   :  { %p73_p5 = scmp.ne.s32.totalorder %s129_s3, %s72_s21  ;;  %p76_p6 = scmp.lt.u32.totalorder %s72_s21, %s129_s3 }
  0xb7   :  { %p78_p7 = pnand %p76_p6, %p73_p5 }
  0xb9   :  { %81 = shalt.err (!%p78_p7)
}
  0xba   :  { %50 = dma.vmem_to_hbm [thread:$0]  %s48_s18, 16, %s129_s3, [#allocation4]  }
  0xbb   :  { %82 = dma.done.wait [#allocation4], 16  }
  0xbc   :  { %83 = vsyncadd [#allocation4], 4294967280 }
  0xbd   :  { %54 = vsyncpa [#allocation4], 1 }

</bundles_post_ra>
